<compile_context>
chip_gen: v7x
topology: tpu7x:2x2x1
jax: 0.10.0
libtpu: 0.0.40
codegen_flags: <defaults>
</compile_context>

<pallas_src>
import functools

import jax
import jax.numpy as jnp
from jax.experimental import pallas as pl
from jax.experimental.pallas import tpu as pltpu


def _categorical_net_kernel(n_hidden, x_ref, *refs):
    """refs = (w0, b0, ..., w_{H-1}, b_{H-1}, w_out, b_out, o_ref).

    Hidden weights are pre-transposed to (in, out) so each hidden layer is a plain
    `h @ w + b` MXU matmul with an f32 accumulator. The final head keeps the PyTorch
    (out, in) layout so the last matmul directly produces the transposed logits block
    (num_outputs, tb): the batch sits on the 128-lane axis -> lane-dense stores.
    Matmul operands stay in the (possibly bf16) MXU dtype; bias add / ReLU are f32.
    """
    o_ref = refs[-1]
    params = refs[:-1]
    mxu_dtype = x_ref.dtype

    h = x_ref[...]                                               # (tb, num_inputs), MXU dtype
    for li in range(n_hidden):
        w = params[2 * li][...]                                  # (in, out), MXU dtype
        b = params[2 * li + 1][...]                              # (1, out),  f32
        z = jnp.dot(h, w, preferred_element_type=jnp.float32) + b
        h = jnp.maximum(z, 0.0).astype(mxu_dtype)                # ReLU (f32), back to MXU dtype

    w_out = params[-2][...]                                      # (num_outputs, in_last)
    b_out = params[-1][...]                                      # (num_outputs, 1), f32
    # logits^T = W_out @ h^T  ->  (num_outputs, tb); contract on the feature dim.
    logits_t = jax.lax.dot_general(
        w_out, h, (((1,), (1,)), ((), ())),
        preferred_element_type=jnp.float32) + b_out
    o_ref[...] = logits_t.astype(o_ref.dtype)


def categorical_net_forward(x, weights, biases, *, block_batch=1024, use_bf16=True):
    """logits = final_linear(MLP(x)) via one fused Pallas kernel.

    x:       (B, num_inputs) float32
    weights: list of PyTorch-layout (out_features, in_features) matrices,
             ordered [hidden layers..., final categorical linear]
    biases:  list of (out_features,) vectors, same order
    returns: (B, num_outputs) float32 logits
    """
    B, num_inputs = x.shape
    n_layers = len(weights)
    n_hidden = n_layers - 1
    num_outputs = int(weights[-1].shape[0])

    mxu_dtype = jnp.bfloat16 if use_bf16 else jnp.float32
    x_in = x.astype(mxu_dtype)

    # Hidden weights -> (in, out) in MXU dtype; final head stays (out, in) so the last
    # matmul emits the transposed (lane-dense) logits block. Biases stay f32.
    params = []
    for li in range(n_hidden):
        params.append(jnp.asarray(weights[li], jnp.float32).T.astype(mxu_dtype))
        params.append(jnp.asarray(biases[li], jnp.float32).reshape(1, -1))
    params.append(jnp.asarray(weights[-1], jnp.float32).astype(mxu_dtype))    # (out, in)
    params.append(jnp.asarray(biases[-1], jnp.float32).reshape(-1, 1))        # (out, 1)

    # Batch tiling, with no wrapper-side pad / slice:
    #  - small B: a single full-extent block (block dim == array dim, any B allowed);
    #  - large B: lane-aligned (multiple-of-128) tiles and >= 2 grid steps so the
    #    "parallel" axis can shard across v7x's 2 TensorCores; the partial last block
    #    is handled by Pallas (garbage tail rows only feed dropped output lanes).
    if B <= 256:
        tb = B
    else:
        tb = max(128, min(block_batch, ((B // 2) // 128) * 128))
    grid = (pl.cdiv(B, tb),)

    in_specs = [pl.BlockSpec((tb, num_inputs), lambda i: (i, 0))]
    for p in params:
        # Constant index_map -> parameter stays resident in VMEM across all grid steps;
        # single-buffered (no second copy) to keep VMEM headroom on v7x (64 MiB).
        in_specs.append(
            pl.BlockSpec(p.shape, lambda i: (0, 0), pipeline_mode=pl.Buffered(1)))

    # Transposed, lane-dense output: (num_outputs, B), batch on the 128-lane axis.
    out_specs = pl.BlockSpec((num_outputs, tb), lambda i: (0, i))

    flops = 2 * B * sum(int(w.shape[0]) * int(w.shape[1]) for w in weights)
    bytes_accessed = (
        x_in.size * x_in.dtype.itemsize
        + sum(int(p.size) * p.dtype.itemsize for p in params)
        + B * num_outputs * 4)

    logits_t = pl.pallas_call(
        functools.partial(_categorical_net_kernel, n_hidden),
        out_shape=jax.ShapeDtypeStruct((num_outputs, B), jnp.float32),
        grid=grid,
        in_specs=in_specs,
        out_specs=out_specs,
        compiler_params=pltpu.CompilerParams(
            dimension_semantics=("parallel",),
            vmem_limit_bytes=32 * 1024 * 1024,   # tiles are small; safe on v5e/v6e/v7x
        ),
        cost_estimate=pl.CostEstimate(
            flops=flops, transcendentals=0, bytes_accessed=bytes_accessed),
    )(x_in, *params)

    # (num_outputs, B) -> (B, num_outputs); tiny copy since num_outputs << B.
    return logits_t.T


def _orthogonal(key, out_features, in_features, gain=1.0):
    """Deterministic orthogonal init (matches nn.init.orthogonal_ in spirit)."""
    n, m = max(out_features, in_features), min(out_features, in_features)
    a = jax.random.normal(key, (n, m), dtype=jnp.float32)
    q, r = jnp.linalg.qr(a)
    q = q * jnp.sign(jnp.diagonal(r))
    if out_features < in_features:
        q = q.T
    return gain * q[:out_features, :in_features]


if __name__ == "__main__":
    key = jax.random.PRNGKey(0)
    k_x, k_w1, k_w2, k_w3 = jax.random.split(key, 4)

    batch = 300               # deliberately tile-misaligned: exercises the partial last block
    num_inputs = 32
    hidden_sizes = (64, 32)   # MLP hidden layers; mlp.output_size == hidden_sizes[-1]
    num_outputs = 8           # number of discrete actions

    # MLP.orthogonal_(): orthogonal hidden weights (gain 1), zero biases.
    # Final linear: orthogonal with gain=0.01, zero bias (CategoricalNet.__init__).
    w1 = _orthogonal(k_w1, hidden_sizes[0], num_inputs, gain=1.0)
    w2 = _orthogonal(k_w2, hidden_sizes[1], hidden_sizes[0], gain=1.0)
    w3 = _orthogonal(k_w3, num_outputs, hidden_sizes[1], gain=0.01)
    b1 = jnp.zeros((hidden_sizes[0],), jnp.float32)
    b2 = jnp.zeros((hidden_sizes[1],), jnp.float32)
    b3 = jnp.zeros((num_outputs,), jnp.float32)

    x = jax.random.normal(k_x, (batch, num_inputs), dtype=jnp.float32)

    # block_batch=128 -> tb=128, 3 grid steps (last one partial) at this demo size,
    # exercising the lane-dense transposed output path and Pallas tail handling.
    logits = categorical_net_forward(x, [w1, w2, w3], [b1, b2, b3], block_batch=128)
    logits = jax.block_until_ready(logits)

    # Plain-JAX f32 reference of the same forward pass (logits of the Categorical).
    h = jnp.maximum(x @ w1.T + b1, 0.0)
    h = jnp.maximum(h @ w2.T + b2, 0.0)
    ref = h @ w3.T + b3

    assert logits.shape == (batch, num_outputs)
    # bf16 MXU inputs (f32 accumulation) vs. f32 reference -> slightly looser tolerance.
    max_err = float(jnp.max(jnp.abs(logits - ref)))
    assert jnp.allclose(logits, ref, atol=1e-2, rtol=2e-2), max_err

    print("KERNEL_OK")
</pallas_src>

<mosaic_0001>
module attributes {stable_mosaic.version = 11 : i64} {
  func.func @_categorical_net_kernel(%arg0: i32, %arg1: memref<128x32xbf16, #tpu.memory_space<vmem>>, %arg2: memref<32x64xbf16, #tpu.memory_space<vmem>>, %arg3: memref<1x64xf32, #tpu.memory_space<vmem>>, %arg4: memref<64x32xbf16, #tpu.memory_space<vmem>>, %arg5: memref<1x32xf32, #tpu.memory_space<vmem>>, %arg6: memref<8x32xbf16, #tpu.memory_space<vmem>>, %arg7: memref<8x1xf32, #tpu.memory_space<vmem>>, %arg8: memref<8x128xf32, #tpu.memory_space<vmem>>) attributes {dimension_semantics = [#tpu.dimension_semantics<parallel>], iteration_bounds = array<i64: 3>, scalar_prefetch = 0 : i64, scratch_operands = 0 : i64, tpu.core_type = #tpu.core_type<tc>, window_params = [{transform_indices = @transform_0, window_bounds = array<i64: 128, 32>}, {pipeline_mode = #tpu.pipeline_mode<synchronous>, transform_indices = @transform_1, window_bounds = array<i64: 32, 64>}, {pipeline_mode = #tpu.pipeline_mode<synchronous>, transform_indices = @transform_2, window_bounds = array<i64: 1, 64>}, {pipeline_mode = #tpu.pipeline_mode<synchronous>, transform_indices = @transform_3, window_bounds = array<i64: 64, 32>}, {pipeline_mode = #tpu.pipeline_mode<synchronous>, transform_indices = @transform_4, window_bounds = array<i64: 1, 32>}, {pipeline_mode = #tpu.pipeline_mode<synchronous>, transform_indices = @transform_5, window_bounds = array<i64: 8, 32>}, {pipeline_mode = #tpu.pipeline_mode<synchronous>, transform_indices = @transform_6, window_bounds = array<i64: 8, 1>}, {transform_indices = @transform_7, window_bounds = array<i64: 8, 128>}]} {
    %c0 = arith.constant 0 : index
    %c0_0 = arith.constant 0 : index
    %0 = vector.load %arg1[%c0, %c0_0] : memref<128x32xbf16, #tpu.memory_space<vmem>>, vector<128x32xbf16>
    %c0_1 = arith.constant 0 : index
    %c0_2 = arith.constant 0 : index
    %1 = vector.load %arg2[%c0_1, %c0_2] : memref<32x64xbf16, #tpu.memory_space<vmem>>, vector<32x64xbf16>
    %c0_3 = arith.constant 0 : index
    %c0_4 = arith.constant 0 : index
    %2 = vector.load %arg3[%c0_3, %c0_4] : memref<1x64xf32, #tpu.memory_space<vmem>>, vector<1x64xf32>
    %cst = arith.constant dense<0.000000e+00> : vector<128x64xf32>
    %3 = tpu.matmul %0, %1, %cst {dimension_numbers = #tpu.dot_dimension_numbers<[1], [0], [0], [1], [0, 0, 1, 1], [], []>} : vector<128x32xbf16>, vector<32x64xbf16>, vector<128x64xf32> -> vector<128x64xf32>
    %4 = vector.broadcast %2 : vector<1x64xf32> to vector<128x64xf32>
    %5 = arith.addf %3, %4 : vector<128x64xf32>
    %cst_5 = arith.constant 0.000000e+00 : f32
    %6 = vector.broadcast %cst_5 : f32 to vector<128x64xf32>
    %7 = arith.maximumf %5, %6 : vector<128x64xf32>
    %8 = arith.truncf %7 : vector<128x64xf32> to vector<128x64xbf16>
    %c0_6 = arith.constant 0 : index
    %c0_7 = arith.constant 0 : index
    %9 = vector.load %arg4[%c0_6, %c0_7] : memref<64x32xbf16, #tpu.memory_space<vmem>>, vector<64x32xbf16>
    %c0_8 = arith.constant 0 : index
    %c0_9 = arith.constant 0 : index
    %10 = vector.load %arg5[%c0_8, %c0_9] : memref<1x32xf32, #tpu.memory_space<vmem>>, vector<1x32xf32>
    %cst_10 = arith.constant dense<0.000000e+00> : vector<128x32xf32>
    %11 = tpu.matmul %8, %9, %cst_10 {dimension_numbers = #tpu.dot_dimension_numbers<[1], [0], [0], [1], [0, 0, 1, 1], [], []>} : vector<128x64xbf16>, vector<64x32xbf16>, vector<128x32xf32> -> vector<128x32xf32>
    %12 = vector.broadcast %10 : vector<1x32xf32> to vector<128x32xf32>
    %13 = arith.addf %11, %12 : vector<128x32xf32>
    %cst_11 = arith.constant 0.000000e+00 : f32
    %14 = vector.broadcast %cst_11 : f32 to vector<128x32xf32>
    %15 = arith.maximumf %13, %14 : vector<128x32xf32>
    %16 = arith.truncf %15 : vector<128x32xf32> to vector<128x32xbf16>
    %c0_12 = arith.constant 0 : index
    %c0_13 = arith.constant 0 : index
    %17 = vector.load %arg6[%c0_12, %c0_13] : memref<8x32xbf16, #tpu.memory_space<vmem>>, vector<8x32xbf16>
    %c0_14 = arith.constant 0 : index
    %c0_15 = arith.constant 0 : index
    %18 = vector.load %arg7[%c0_14, %c0_15] : memref<8x1xf32, #tpu.memory_space<vmem>>, vector<8x1xf32>
    %cst_16 = arith.constant dense<0.000000e+00> : vector<8x128xf32>
    %19 = tpu.matmul %17, %16, %cst_16 {dimension_numbers = #tpu.dot_dimension_numbers<[1], [1], [0], [0], [0, 0, 1, 0], [], []>} : vector<8x32xbf16>, vector<128x32xbf16>, vector<8x128xf32> -> vector<8x128xf32>
    %20 = vector.broadcast %18 : vector<8x1xf32> to vector<8x128xf32>
    %21 = arith.addf %19, %20 : vector<8x128xf32>
    %c0_17 = arith.constant 0 : index
    %c0_18 = arith.constant 0 : index
    %22 = vector.load %arg8[%c0_17, %c0_18] : memref<8x128xf32, #tpu.memory_space<vmem>>, vector<8x128xf32>
    tpu.vector_store %arg8[%c0_17, %c0_18], %21 {strides = array<i32>} : memref<8x128xf32, #tpu.memory_space<vmem>>, vector<8x128xf32>,
    return
  }
  func.func @transform_0(%arg0: i32) -> (i32, i32) {
    %c0_i32 = arith.constant 0 : i32
    %c0_i32_0 = arith.constant 0 : i32
    return %arg0, %c0_i32 : i32, i32
  }
  func.func @transform_1(%arg0: i32) -> (i32, i32) {
    %c0_i32 = arith.constant 0 : i32
    %c0_i32_0 = arith.constant 0 : i32
    %c0_i32_1 = arith.constant 0 : i32
    return %c0_i32, %c0_i32_0 : i32, i32
  }
  func.func @transform_2(%arg0: i32) -> (i32, i32) {
    %c0_i32 = arith.constant 0 : i32
    %c0_i32_0 = arith.constant 0 : i32
    %c0_i32_1 = arith.constant 0 : i32
    return %c0_i32, %c0_i32_0 : i32, i32
  }
  func.func @transform_3(%arg0: i32) -> (i32, i32) {
    %c0_i32 = arith.constant 0 : i32
    %c0_i32_0 = arith.constant 0 : i32
    %c0_i32_1 = arith.constant 0 : i32
    return %c0_i32, %c0_i32_0 : i32, i32
  }
  func.func @transform_4(%arg0: i32) -> (i32, i32) {
    %c0_i32 = arith.constant 0 : i32
    %c0_i32_0 = arith.constant 0 : i32
    %c0_i32_1 = arith.constant 0 : i32
    return %c0_i32, %c0_i32_0 : i32, i32
  }
  func.func @transform_5(%arg0: i32) -> (i32, i32) {
    %c0_i32 = arith.constant 0 : i32
    %c0_i32_0 = arith.constant 0 : i32
    %c0_i32_1 = arith.constant 0 : i32
    return %c0_i32, %c0_i32_0 : i32, i32
  }
  func.func @transform_6(%arg0: i32) -> (i32, i32) {
    %c0_i32 = arith.constant 0 : i32
    %c0_i32_0 = arith.constant 0 : i32
    %c0_i32_1 = arith.constant 0 : i32
    return %c0_i32, %c0_i32_0 : i32, i32
  }
  func.func @transform_7(%arg0: i32) -> (i32, i32) {
    %c0_i32 = arith.constant 0 : i32
    %c0_i32_0 = arith.constant 0 : i32
    return %c0_i32, %arg0 : i32, i32
  }
}

</mosaic_0001>

<bundles_post_ra>
// kernel: tpu_custom_call.1
= control target key start
LH: loop header
LB: loop body
LE: loop exit
PB: predicated region body
PF: predicated region fallthrough
CT: control target
= control target key end

     0   :  { %12 = vsyncpa [#allocation3], 0  ;;  %s1325_s0 = inlined_call_operand.vmem [shape: bf16[300,32], index: 0, kind: input, shape index: {}]   ;;  %s1326_s1 = inlined_call_operand.vmem [shape: bf16[32,64], index: 1, kind: input, shape index: {}]   ;;  %s1327_s2 = inlined_call_operand.vmem [shape: f32[1,64], index: 2, kind: input, shape index: {}]   ;;  %s1328_s3 = inlined_call_operand.vmem [shape: bf16[64,32], index: 3, kind: input, shape index: {}]   ;;  %s1329_s4 = inlined_call_operand.vmem [shape: f32[1,32], index: 4, kind: input, shape index: {}]   ;;  %s1330_s5 = inlined_call_operand.vmem [shape: bf16[8,32], index: 5, kind: input, shape index: {}]   ;;  %s1331_s6 = inlined_call_operand.vmem [shape: f32[8,1], index: 6, kind: input, shape index: {}]   ;;  %s1332_s7 = inlined_call_operand.hbm [shape: f32[8,300], index: 7, kind: output, shape index: {}]  }
   0x1   :  { %14 = vsyncpa [#allocation3 + $0x1], 0  ;;  %s1162_s24 = smov 0   ;;  %s1164_s25 = smov 0  }
   0x2   :  { %s1166_s26 = smov 0   ;;  %s1168_s27 = smov 0  }
   0x3 LB: > { %s1183_s28 = sadd.s32 4294967295, %s1116_s27   ;;  %s858_s29 = sadd.s32 4294967294, %s1116_s27   ;;  %s1116_s27 = sphi %s1168_s27, %s1338_s27   ;;  %s1112_s26 = sphi %s1166_s26, %s1337_s26   ;;  %s1108_s25 = sphi %s1164_s25, %s1336_s25   ;;  %s1104_s24 = sphi %s1162_s24, %s1335_s24  }
   0x4   : > { %s1187_s30 = sadd.s32 1, %s1116_s27   ;;  %s179_s8 = sadd.s32 1, %s1112_s26 }
   0x5   : > { %s176_s9 = ssub.s32 %s1116_s27, %s1187_s30  ;;  %p189_p0 = scmp.ne.s32.totalorder %s1112_s26, %s1108_s25 }
   0x6   : > { %p177_p1 = scmp.eq.s32.totalorder %s176_s9, 0  ;;  %p190_p2 = scmp.eq.s32.totalorder %s1183_s28, 2 }
   0x7   : > { %p195_p3 = scmp.ne.s32.totalorder %s1108_s25, %s1104_s24  ;;  %p196_p4 = scmp.eq.s32.totalorder %s858_s29, 2 }
   0x8   : > { %s1198_s10 = scalar_select %p177_p1, %s1112_s26, %s179_s8  }
   0x9   : > { %p1200_p5 = por %p190_p2, %p189_p0  ;;  %p1204_p6 = por %p196_p4, %p195_p3 }
   0xa   : > { %p861_p7 = scmp.ge.s32.totalorder %s1116_s27, 1  ;;  %p249_p8 = scmp.lt.s32.totalorder %s1116_s27, 4 }
   0xc   : > { %p250_p9 = pnand %p861_p7, %p249_p8 }
   0xd   : > { %v1040_v0 = vld [vmem:[%s1326_s1] sm:$0xff] (!%p250_p9)   ;;  %s863_s15 = sshll.u32 (!%p250_p9), %s1183_s28, 4  ;;  %v1041_v1 = vld [vmem:[%s1326_s1 + $0x8] sm:$0xff] (!%p250_p9)   ;;  %vm379_vm0 = vcmask (!%p250_p9), 261120   ;;  %v1052_v7 = vld [vmem:[%s1328_s3 + $0x10] sm:$0xff] (!%p250_p9)   ;;  %vm564_vm1 = vcmask (!%p250_p9), 523264  }
   0xe   : > { %253 = sbr.rel (%p250_p9) target bundleno = 761 (0x2f9), region = 48  ;;  %p290_p10 = scmp.lt.s32.totalorder (!%p250_p9), %s863_s15, 37  ;;  %933 = vmatprep.subr.bf16.mxu1 (!%p250_p9), %v1040_v0  ;;  %v1050_v2 = vld [vmem:[%s1328_s3] sm:$0xff] (!%p250_p9)   ;;  %v1051_v3 = vld [vmem:[%s1328_s3 + $0x8] sm:$0xff] (!%p250_p9)   ;;  %v1053_v13 = vld [vmem:[%s1328_s3 + $0x18] sm:$0xff] (!%p250_p9)   ;;  %vm1119_vm2 = vmmov (!%p250_p9), 0  }
   0xf   : > { %934 = vmatpush3.bf16.msra.mxu1 (!%p250_p9), %v1040_v0  ;;  %v865_v14 = vld [vmem:[%s1327_s2] ss:$0 sm:$0xff] (!%p250_p9)  ;;  %s282_s29 = sand.u32 (!%p250_p9), 1, %s1108_s25   ;;  %s899_s9 = sshll.u32 (!%p250_p9), %s1183_s28, 7 }
  0x10   : > { %935 = vmatprep.subr.bf16.mxu1 (!%p250_p9), %v1041_v1  ;;  %s862_s8 = sshll.u32 (!%p250_p9), %s282_s29, 3  ;;  %s1283_s17 = scalar_lea.hbm (!%p250_p9), %s1332_s7, %s899_s9 }
  0x11   : > { %s284_s13 = scalar_lea.vmem (!%p250_p9), [#allocation2], %s862_s8  ;;  %s786_s18 = scalar_lea.sflag (!%p250_p9), [#allocation3], %s282_s29 }
  0x12   : > { %s799_s14 = sshll.u32 (!%p250_p9), %s284_s13, 4  ;;  %s1121_s19 = smov (!%p250_p9), [#allocation2]   ;;  %s1285_s14 = int_to_ptr.vmem [resolvable:$true] %s799_s14 }
  0x13   : > { %936 = vmatpush3.bf16.msra.mxu1 (!%p250_p9), %v1041_v1  ;;  %s1054_s28 = scalar_lea.vmem (!%p250_p9), %s1285_s14, 128 }
  0x14   : > { %953 = vmatprep.subr.bf16.mxu1 (!%p250_p9), %v1050_v2  ;;  %p1055_p11 = scmp.ne.s32.totalorder (!%p250_p9), %s1285_s14, %s1054_s28 }
  0x15   : > { %s1340_s15 = smov (!%p290_p10, %s863_s15), 37 }
  0x16   : > { %s864_s20 = sshll.u32 %s1340_s15, 2  ;;  %p1056_p12 = pnand %p1055_p11, %p1200_p5 }
  0x17   : > { %s293_s23 = scalar_lea.vmem %s1325_s0, %s864_s20  ;;  %s1058_s20 = sshll.u32 %s1121_s19, 4  ;;  %s1059_s20 = int_to_ptr.vmem [resolvable:$false] %s1058_s20 }
  0x18   : > { %v1042_v4 = vld [vmem:[%s293_s23] sm:$0xff]   ;;  %v1043_v5 = vld [vmem:[%s293_s23 + $0x8] sm:$0xff]   ;;  %v1044_v6 = vld [vmem:[%s293_s23 + $0x10] sm:$0xff]   ;;  %p1057_p13 = pneg %p1056_p12  ;;  %s1060_s21 = scalar_lea.vmem %s1059_s20, 256 }
  0x19   : > { %937 = vmatprep.mubr.msk.bf16.mxu1 %vm379_vm0, %v1042_v4  ;;  %v1045_v8 = vld [vmem:[%s293_s23 + $0x18] sm:$0xff]   ;;  %v1046_v9 = vld [vmem:[%s293_s23 + $0x20] sm:$0xff]   ;;  %v1047_v10 = vld [vmem:[%s293_s23 + $0x28] sm:$0xff]   ;;  %p1061_p0 = scmp.lt.s32.totalorder %s1285_s14, %s1059_s20  ;;  %p1062_p1 = scmp.lt.s32.totalorder %s1060_s21, %s1054_s28 }
  0x1a   : > { %938 = vmatmul.mubr.msk.bf16.vlgmr.msra.gmra.mrb[0].mxu1 %vm379_vm0, %v1043_v5  ;;  %v1048_v11 = vld [vmem:[%s293_s23 + $0x30] sm:$0xff]   ;;  %v1049_v12 = vld [vmem:[%s293_s23 + $0x38] sm:$0xff]  }
  0x1b   : > { %941 = vmatprep.mubr.msk.bf16.mxu1 %vm379_vm0, %v1044_v6  ;;  %954 = vmatpush3.bf16.msra.mxu1 %v1050_v2  ;;  %p1063_p2 = por %p1062_p1, %p1061_p0 }
  0x1c   : > { %955 = vmatprep.subr.bf16.mxu1 %v1051_v3 }
  0x1d   : > { %p1064_p3 = pnand %p1063_p2, %p1057_p13 }
  0x1f   : > { %956 = vmatpush3.bf16.msra.mxu1 %v1051_v3 }
  0x20   : > { %957 = vmatprep.subr.bf16.mxu1 %v1052_v7 }
  0x22   : > { %942 = vmatmul.mubr.msk.bf16.gmra.mrb[4].mxu1 %vm379_vm0, %v1045_v8  ;;  %v711_v8 = vld [vmem:[%s1331_s6] sm:$0xff] }
  0x23   : > { %945 = vmatprep.mubr.msk.bf16.mxu1 %vm379_vm0, %v1046_v9  ;;  %958 = vmatpush3.bf16.msra.mxu1 %v1052_v7  ;;  %v1118_v7 = vmov 0.0   ;;  %v1120_v9 = vmov 0  }
  0x24   : > { %959 = vmatprep.subr.bf16.mxu1 %v1053_v13  ;;  %977 = vmatprep.subr.bf16.mxu0 %v1118_v7 }
  0x25   : > { %993 = vmatprep.mubr.msk.bf16.mxu0 %vm1119_vm2, %v1118_v7  ;;  %1039 = vset.pattern.permute.xlu0 %v1120_v9 }
  0x26   : > { %714 = vperm.xlu0 %1039, %v711_v8  }
  0x27   : > { %960 = vmatpush3.bf16.msra.mxu1 %v1053_v13 }
  0x2a   : > { %946 = vmatmul.mubr.msk.bf16.gmra.mrb[8].mxu1 %vm379_vm0, %v1047_v10  ;;  %v884_v10 = vld [vmem:[%s1329_s4] ss:$0 sm:$0xff] }
  0x2b   : > { %949 = vmatprep.mubr.msk.bf16.mxu1 %vm379_vm0, %v1048_v11 }
  0x32   : > { %950 = vmatmul.mubr.msk.bf16.gmra.mrb[12].mxu1 %vm379_vm0, %v1049_v12 }
  0xed   : > { %v939_v15 = vpop.f32.mrb[0].mxu1 }
  0xee   : > { %v447_v16 = vadd.f32 %v939_v15, %v865_v14  ;;  %v438_v17 = vpop.f32.mrb[1].mxu1 }
  0xef   : > { %v439_v18 = vadd.f32 %v865_v14, %v438_v17  ;;  %v940_v19 = vpop.f32.mrb[2].mxu1 }
  0xf0   : > { %v450_v20 = vadd.f32 %v940_v19, %v865_v14  ;;  %v441_v21 = vpop.f32.mrb[3].mxu1  ;;  %v503_v23 = vmax.f32 %v447_v16, 0.0 }
  0xf1   : > { %v442_v22 = vadd.f32 %v865_v14, %v441_v21  ;;  %v501_v25 = vmax.f32 %v439_v18, 0.0 }
  0xf2   : > { %v504_v24 = vmax.f32 %v450_v20, 0.0 }
  0xf3   : > { %v502_v26 = vmax.f32 %v442_v22, 0.0 }
  0xf4   : > { %v518_v27 = vpack.c.bf16 %v504_v24, %v503_v23 }
  0xf5   : > { %v517_v28 = vpack.c.bf16 %v502_v26, %v501_v25  ;;  %v943_v29 = vpop.f32.mrb[4].mxu1 }
  0xf6   : > { %v463_v30 = vadd.f32 %v943_v29, %v865_v14  ;;  %v454_v31 = vpop.f32.mrb[5].mxu1 }
  0xf7   : > { %v455_v32 = vadd.f32 %v865_v14, %v454_v31  ;;  %961 = vmatprep.mubr.msk.bf16.mxu1 %vm564_vm1, %v517_v28  ;;  %v944_v33 = vpop.f32.mrb[6].mxu1 }
  0xf8   : > { %v507_v34 = vmax.f32 %v463_v30, 0.0  ;;  %v466_v35 = vadd.f32 %v944_v33, %v865_v14  ;;  %962 = vmatmul.mubr.msk.bf16.vlgmr.msra.gmra.mrb[16].mxu1 %vm564_vm1, %v518_v27  ;;  %v457_v36 = vpop.f32.mrb[7].mxu1 }
  0xf9   : > { %v505_v37 = vmax.f32 %v455_v32, 0.0  ;;  %v458_v38 = vadd.f32 %v865_v14, %v457_v36 }
  0xfa   : > { %v508_v39 = vmax.f32 %v466_v35, 0.0 }
  0xfb   : > { %v506_v40 = vmax.f32 %v458_v38, 0.0 }
  0xfc   : > { %v520_v41 = vpack.c.bf16 %v508_v39, %v507_v34 }
  0xfd   : > { %v519_v42 = vpack.c.bf16 %v506_v40, %v505_v37  ;;  %v947_v43 = vpop.f32.mrb[8].mxu1 }
  0xfe   : > { %v479_v44 = vadd.f32 %v947_v43, %v865_v14  ;;  %v470_v45 = vpop.f32.mrb[9].mxu1 }
  0xff   : > { %965 = vmatprep.mubr.msk.bf16.mxu1 %vm564_vm1, %v519_v42  ;;  %v471_v46 = vadd.f32 %v865_v14, %v470_v45  ;;  %v948_v47 = vpop.f32.mrb[10].mxu1 }
 0x100   : > { %966 = vmatmul.mubr.msk.bf16.gmra.mrb[20].mxu1 %vm564_vm1, %v520_v41  ;;  %v511_v48 = vmax.f32 %v479_v44, 0.0  ;;  %v482_v49 = vadd.f32 %v948_v47, %v865_v14  ;;  %v473_v50 = vpop.f32.mrb[11].mxu1 }
 0x101   : > { %v509_v51 = vmax.f32 %v471_v46, 0.0  ;;  %v474_v52 = vadd.f32 %v865_v14, %v473_v50 }
 0x102   : > { %v512_v53 = vmax.f32 %v482_v49, 0.0 }
 0x103   : > { %v510_v54 = vmax.f32 %v474_v52, 0.0 }
 0x104   : > { %v522_v55 = vpack.c.bf16 %v512_v53, %v511_v48 }
 0x105   : > { %v521_v56 = vpack.c.bf16 %v510_v54, %v509_v51  ;;  %v951_v57 = vpop.f32.mrb[12].mxu1 }
 0x106   : > { %v495_v58 = vadd.f32 %v951_v57, %v865_v14  ;;  %v486_v59 = vpop.f32.mrb[13].mxu1 }
 0x107   : > { %969 = vmatprep.mubr.msk.bf16.mxu1 %vm564_vm1, %v521_v56  ;;  %v487_v60 = vadd.f32 %v865_v14, %v486_v59  ;;  %v952_v61 = vpop.f32.mrb[14].mxu1 }
 0x108   : > { %970 = vmatmul.mubr.msk.bf16.gmra.mrb[24].mxu1 %vm564_vm1, %v522_v55  ;;  %v515_v62 = vmax.f32 %v495_v58, 0.0  ;;  %v498_v63 = vadd.f32 %v952_v61, %v865_v14  ;;  %v489_v0 = vpop.f32.mrb[15].mxu1 }
 0x109   : > { %v513_v1 = vmax.f32 %v487_v60, 0.0  ;;  %v490_v2 = vadd.f32 %v865_v14, %v489_v0 }
 0x10a   : > { %v516_v3 = vmax.f32 %v498_v63, 0.0 }
 0x10b   : > { %v514_v4 = vmax.f32 %v490_v2, 0.0 }
 0x10c   : > { %v524_v5 = vpack.c.bf16 %v516_v3, %v515_v62 }
 0x10d   : > { %v523_v6 = vpack.c.bf16 %v514_v4, %v513_v1 }
 0x10f   : > { %973 = vmatprep.mubr.msk.bf16.mxu1 %vm564_vm1, %v523_v6 }
 0x110   : > { %974 = vmatmul.mubr.msk.bf16.gmra.mrb[28].mxu1 %vm564_vm1, %v524_v5 }
 0x1cb   : > { %v963_v11 = vpop.f32.mrb[16].mxu1 }
 0x1cc   : > { %v632_v12 = vadd.f32 %v963_v11, %v884_v10  ;;  %v623_v13 = vpop.f32.mrb[17].mxu1 }
 0x1cd   : > { %v624_v14 = vadd.f32 %v884_v10, %v623_v13  ;;  %v964_v15 = vpop.f32.mrb[18].mxu1  ;;  %v715_v13 = vpop.permute.xlu0 %714 }
 0x1ce   : > { %v635_v16 = vadd.f32 %v964_v15, %v884_v10  ;;  %v626_v17 = vpop.f32.mrb[19].mxu1  ;;  %v688_v19 = vmax.f32 %v632_v12, 0.0  ;;  %v710_v12 = vld [vmem:[%s1330_s5] sm:$0xf] }
 0x1cf   : > { %v627_v18 = vadd.f32 %v884_v10, %v626_v17  ;;  %v686_v21 = vmax.f32 %v624_v14, 0.0 }
 0x1d0   : > { %v689_v20 = vmax.f32 %v635_v16, 0.0 }
 0x1d1   : > { %v687_v22 = vmax.f32 %v627_v18, 0.0 }
 0x1d2   : > { %v703_v23 = vpack.c.bf16 %v689_v20, %v688_v19 }
 0x1d3   : > { %v967_v24 = vpop.f32.mrb[20].mxu1  ;;  %v702_v25 = vpack.c.bf16 %v687_v22, %v686_v21 }
 0x1d4   : > { %v648_v26 = vadd.f32 %v967_v24, %v884_v10  ;;  %v639_v27 = vpop.f32.mrb[21].mxu1  ;;  %v724_v43 = vsel %vm379_vm0, %v703_v23, 0 }
 0x1d5   : > { %v640_v28 = vadd.f32 %v884_v10, %v639_v27  ;;  %v968_v29 = vpop.f32.mrb[22].mxu1  ;;  %v721_v30 = vsel %vm379_vm0, %v702_v25, 0 }
 0x1d6   : > { %v692_v31 = vmax.f32 %v648_v26, 0.0  ;;  %v651_v32 = vadd.f32 %v968_v29, %v884_v10  ;;  %978 = vmatpush3.bf16.xpose.msra.mxu0 %v721_v30  ;;  %v642_v33 = vpop.f32.mrb[23].mxu1 }
 0x1d7   : > { %v690_v34 = vmax.f32 %v640_v28, 0.0  ;;  %v643_v35 = vadd.f32 %v884_v10, %v642_v33  ;;  %979 = vmatprep.subr.bf16.mxu0 %v1118_v7 }
 0x1d8   : > { %v693_v36 = vmax.f32 %v651_v32, 0.0 }
 0x1d9   : > { %v691_v37 = vmax.f32 %v643_v35, 0.0 }
 0x1da   : > { %v705_v38 = vpack.c.bf16 %v693_v36, %v692_v31 }
 0x1db   : > { %v704_v39 = vpack.c.bf16 %v691_v37, %v690_v34  ;;  %v971_v40 = vpop.f32.mrb[24].mxu1 }
 0x1dc   : > { %v664_v41 = vadd.f32 %v971_v40, %v884_v10  ;;  %v655_v42 = vpop.f32.mrb[25].mxu1  ;;  %v730_v6 = vsel %vm379_vm0, %v705_v38, 0 }
 0x1dd   : > { %v656_v44 = vadd.f32 %v884_v10, %v655_v42  ;;  %v972_v45 = vpop.f32.mrb[26].mxu1  ;;  %v727_v58 = vsel %vm379_vm0, %v704_v39, 0 }
 0x1de   : > { %980 = vmatpush3.bf16.xpose.msra.mxu0 %v724_v43  ;;  %v696_v46 = vmax.f32 %v664_v41, 0.0  ;;  %v667_v47 = vadd.f32 %v972_v45, %v884_v10  ;;  %v658_v48 = vpop.f32.mrb[27].mxu1 }
 0x1df   : > { %v694_v49 = vmax.f32 %v656_v44, 0.0  ;;  %981 = vmatprep.subr.bf16.mxu0 %v1118_v7  ;;  %v659_v50 = vadd.f32 %v884_v10, %v658_v48 }
 0x1e0   : > { %v697_v51 = vmax.f32 %v667_v47, 0.0 }
 0x1e1   : > { %v695_v52 = vmax.f32 %v659_v50, 0.0 }
 0x1e2   : > { %v707_v53 = vpack.c.bf16 %v697_v51, %v696_v46 }
 0x1e3   : > { %v706_v54 = vpack.c.bf16 %v695_v52, %v694_v49  ;;  %v975_v55 = vpop.f32.mrb[28].mxu1 }
 0x1e4   : > { %v680_v56 = vadd.f32 %v975_v55, %v884_v10  ;;  %v671_v57 = vpop.f32.mrb[29].mxu1  ;;  %v736_v9 = vsel %vm379_vm0, %v707_v53, 0 }
 0x1e5   : > { %v672_v59 = vadd.f32 %v884_v10, %v671_v57  ;;  %v976_v60 = vpop.f32.mrb[30].mxu1  ;;  %v733_v8 = vsel %vm379_vm0, %v706_v54, 0 }
 0x1e6   : > { %982 = vmatpush3.bf16.xpose.msra.mxu0 %v727_v58  ;;  %v700_v61 = vmax.f32 %v680_v56, 0.0  ;;  %v683_v62 = vadd.f32 %v976_v60, %v884_v10  ;;  %v674_v63 = vpop.f32.mrb[31].mxu1 }
 0x1e7   : > { %983 = vmatprep.subr.bf16.mxu0 %v1118_v7  ;;  %v698_v0 = vmax.f32 %v672_v59, 0.0  ;;  %v675_v1 = vadd.f32 %v884_v10, %v674_v63 }
 0x1e8   : > { %v701_v2 = vmax.f32 %v683_v62, 0.0 }
 0x1e9   : > { %v699_v3 = vmax.f32 %v675_v1, 0.0 }
 0x1ea   : > { %v709_v4 = vpack.c.bf16 %v701_v2, %v700_v61 }
 0x1eb   : > { %v708_v5 = vpack.c.bf16 %v699_v3, %v698_v0 }
 0x1ec   : > { %v742_v11 = vsel %vm379_vm0, %v709_v4, 0 }
 0x1ed   : > { %v739_v10 = vsel %vm379_vm0, %v708_v5, 0 }
 0x1ee   : > { %984 = vmatpush3.bf16.xpose.msra.mxu0 %v730_v6 }
 0x1ef   : > { %985 = vmatprep.subr.bf16.mxu0 %v1118_v7 }
 0x1f6   : > { %986 = vmatpush3.bf16.xpose.msra.mxu0 %v733_v8 }
 0x1f7   : > { %987 = vmatprep.subr.bf16.mxu0 %v1118_v7 }
 0x1fe   : > { %988 = vmatpush3.bf16.xpose.msra.mxu0 %v736_v9 }
 0x1ff   : > { %989 = vmatprep.subr.bf16.mxu0 %v1118_v7 }
 0x206   : > { %990 = vmatpush3.bf16.xpose.msra.mxu0 %v739_v10 }
 0x207   : > { %991 = vmatprep.subr.bf16.mxu0 %v1118_v7 }
 0x20e   : > { %992 = vmatpush3.bf16.xpose.msra.mxu0 %v742_v11 }
 0x215   : > { %994 = vmatmul.mubr.msk.bf16.vlgmr.msra.gmra.mrb[0].mxu0 %vm379_vm0, %v710_v12 }
 0x2e8   : > { %v778_v14 = vpop.f32.mrb[0].mxu0 }
 0x2e9   : > { %v779_v15 = vadd.f32 %v778_v14, %v715_v13  ;;  %v995_v16 = vpop.f32.mrb[1].mxu0 }
 0x2ea   : > { %v781_v7 = vpop.f32.mrb[2].mxu0 }
 0x2eb   : > { %784 = vst [vmem:[%s284_s13] sm:$0xff] %v779_v15  ;;  %v996_v17 = vpop.f32.mrb[3].mxu0 }
 0x2ec   : > { %1067 = shalt.err (!%p1064_p3)
}
 0x2ed   : > { %s1068_s22 = scalar_lea.hbm %s1283_s17, 128  ;;  %s1072_s8 = scalar_lea.hbm %s1332_s7, 384 }
 0x2ee   : > { %p1069_p4 = scmp.ne.s32.totalorder %s1283_s17, %s1068_s22  ;;  %p1073_p9 = scmp.lt.u32.totalorder %s1283_s17, %s1332_s7 }
 0x2ef   : > { %p1074_p10 = scmp.lt.u32.totalorder %s1072_s8, %s1068_s22  ;;  %p1076_p12 = scmp.lt.u32.totalorder %s1068_s22, %s1283_s17 }
 0x2f0   : > { %p1070_p7 = pnand %p1069_p4, %p1200_p5 }
 0x2f1   : > { %p1075_p11 = por %p1074_p10, %p1073_p9 }
 0x2f2   : > { %p1071_p8 = pneg %p1070_p7 }
 0x2f3   : > { %p1077_p13 = por %p1076_p12, %p1075_p11 }
 0x2f5   : > { %p1078_p0 = pnand %p1077_p13, %p1071_p8 }
 0x2f7   : > { %1081 = shalt.err (!%p1078_p0)
}
 0x2f8   : > { %997 = dma.vmem_to_hbm [thread:$0]  (%p1200_p5), %s1285_s14, 128, %s1283_s17, %s786_s18  }
 0x2f9 PF: > { %p1003_p1 = scmp.ge.s32.totalorder %s1116_s27, 2  ;;  %s811_s15 = sand.u32 1, %s1104_s24  }
 0x2fa   : > { %s812_s16 = scalar_lea.sflag [#allocation3], %s811_s15 }
 0x2fb   : > { %p1000_p2 = pnand %p1003_p1, %p1204_p6 }
 0x2fd   : > { %1099 = dma.done.wait (!%p1000_p2), %s812_s16, 128  }
 0x2fe   : > { %1101 = vsyncadd (!%p1000_p2), %s812_s16, 4294967168  ;;  %p17_p3 = scmp.ge.s32.totalorder %s1187_s30, 5   ;;  %s1335_s24 = smov %s1108_s25 }
 0x2ff   : > { %s1336_s25 = smov %s1112_s26  ;;  %s1337_s26 = smov %s1198_s10 }
 0x300   : > { %s1338_s27 = smov %s1187_s30  ;;  %19 = sbr.rel (!%p17_p3) target bundleno = 3 (0x3), region = 83 }
 0x307   :  { %817 = vsyncpa [#allocation3], 1 }
 0x308   :  { %819 = vsyncpa [#allocation3 + $0x1], 1 }

</bundles_post_ra>
